<compile_context>
chip_gen: v6e
topology: v6e:2x2x1
jax: 0.10.0
libtpu: 0.0.40
codegen_flags: <defaults>
</compile_context>

<pallas_src>
import functools

import jax
import jax.numpy as jnp
from jax.experimental import pallas as pl
from jax.experimental.pallas import tpu as pltpu


def _fused_mlp_kernel(*refs, relu_flags, compute_dtype):
    """Chain all linear layers on one batch tile, entirely in VMEM.

    refs = (x_ref, w_0, b_0, w_1, b_1, ..., w_{L-1}, b_{L-1}, o_ref)
    relu_flags[i] is True iff layer i is followed by a ReLU.
    """
    n_layers = len(relu_flags)
    x_ref = refs[0]
    wb_refs = refs[1:1 + 2 * n_layers]
    o_ref = refs[1 + 2 * n_layers]

    h = x_ref[...]                                # native dtype into the MXU
    for li in range(n_layers):
        w = wb_refs[2 * li][...]
        b = wb_refs[2 * li + 1][...]              # (1, out) f32, broadcasts
        acc = jnp.dot(h, w, preferred_element_type=jnp.float32) + b
        if relu_flags[li]:
            acc = jnp.maximum(acc, 0.0)
        if li < n_layers - 1:
            h = acc.astype(compute_dtype)         # back to MXU-native dtype
        else:
            o_ref[...] = acc.astype(o_ref.dtype)


def _flatten_and_fold_layers(params):
    """Flatten encoder+decoder stacks and fold consecutive ReLU-less layers.

    Folding (x @ W1 + b1) @ W2 + b2  ==  x @ (W1 @ W2) + (b1 @ W2 + b2) is
    exact; it removes the encoder-last / decoder-first matmul pair.
    """
    layers, relu_flags = [], []
    for stack in ("encoder", "decoder"):
        st = params[stack]
        for li, (w, b) in enumerate(st):
            layers.append((w, b))
            relu_flags.append(li < len(st) - 1)

    folded, folded_flags = [], []
    i = 0
    while i < len(layers):
        w, b = layers[i]
        flag = relu_flags[i]
        while (not flag) and (i + 1 < len(layers)):
            w2, b2 = layers[i + 1]
            w = w @ w2
            b = b @ w2 + b2
            flag = relu_flags[i + 1]
            i += 1
        folded.append((w, b))
        folded_flags.append(flag)
        i += 1
    return folded, tuple(folded_flags)


def fused_autoencoder(params, x, *, max_tile_b=4096, compute_dtype=None):
    """Run the whole AutoEncoder forward pass in one pallas_call.

    x: (B, input_dim).  params: {"encoder": [(w, b), ...], "decoder": [...]}
    with weights stored as (in, out).  compute_dtype=jnp.bfloat16 enables
    native-MXU bf16 inputs (f32 accumulation) on v6e/v7x.
    """
    layers, relu_flags = _flatten_and_fold_layers(params)
    B, in_dim = x.shape
    out_dim = layers[-1][0].shape[1]

    if compute_dtype is None:
        compute_dtype = x.dtype
    x_c = x.astype(compute_dtype)

    # Batch tiling: full batch as one tile when small; otherwise big tiles.
    # No padding — Pallas masks the ragged tail block (rows are independent).
    tile_b = B if B <= max_tile_b else max_tile_b
    grid = (pl.cdiv(B, tile_b),)

    flat_inputs = [x_c]
    in_specs = [pl.BlockSpec((tile_b, in_dim), lambda i: (i, 0))]
    for w, b in layers:
        flat_inputs.append(w.astype(compute_dtype))
        flat_inputs.append(b.astype(jnp.float32).reshape(1, -1))
        # Whole array resident in VMEM for the entire kernel (no per-step DMA).
        in_specs.append(pl.BlockSpec(memory_space=pltpu.MemorySpace.VMEM))
        in_specs.append(pl.BlockSpec(memory_space=pltpu.MemorySpace.VMEM))

    kernel = functools.partial(
        _fused_mlp_kernel, relu_flags=relu_flags, compute_dtype=compute_dtype)

    out = pl.pallas_call(
        kernel,
        out_shape=jax.ShapeDtypeStruct((B, out_dim), compute_dtype),
        grid_spec=pltpu.PrefetchScalarGridSpec(
            num_scalar_prefetch=0,
            grid=grid,
            in_specs=in_specs,
            out_specs=pl.BlockSpec((tile_b, out_dim), lambda i: (i, 0)),
        ),
        compiler_params=pltpu.CompilerParams(
            dimension_semantics=("parallel",),
        ),
    )(*flat_inputs)
    return out


def init_linear_params(key, in_dim, out_dim, dtype=jnp.float32):
    """Deterministic init mimicking torch.nn.Linear (uniform +/- 1/sqrt(in))."""
    kw, kb = jax.random.split(key)
    bound = 1.0 / float(in_dim) ** 0.5
    # Stored directly as (in, out) == W.T relative to PyTorch's (out, in).
    w = jax.random.uniform(kw, (in_dim, out_dim), dtype, -bound, bound)
    b = jax.random.uniform(kb, (out_dim,), dtype, -bound, bound)
    return w, b


def build_autoencoder_params(key, input_dim, hidden_dims, output_dim):
    enc_dims = [input_dim] + hidden_dims + [output_dim]
    dec_dims = [output_dim] + hidden_dims[::-1] + [input_dim]
    params = {"encoder": [], "decoder": []}
    for stack_name, dims in (("encoder", enc_dims), ("decoder", dec_dims)):
        for ii in range(1, len(dims)):
            key, sub = jax.random.split(key)
            params[stack_name].append(init_linear_params(sub, dims[ii - 1], dims[ii]))
    return params


def autoencoder_reference(params, x):
    """Pure-JAX reference matching AutoEncoder.forward (unfolded layers)."""
    for stack_name in ("encoder", "decoder"):
        layers = params[stack_name]
        for li, (w, b) in enumerate(layers):
            x = x @ w + b
            if li < len(layers) - 1:
                x = jnp.maximum(x, 0.0)
    return x


if __name__ == "__main__":
    key = jax.random.PRNGKey(0)

    input_dim = 32
    hidden_dims = [64, 16]
    output_dim = 8
    batch = 16

    kp, kx = jax.random.split(key)
    params = build_autoencoder_params(kp, input_dim, hidden_dims, output_dim)
    x = jax.random.normal(kx, (batch, input_dim), dtype=jnp.float32)

    ref = autoencoder_reference(params, x)

    # f32 path (layer folding is exact math; only last-bit rounding differs).
    out_f32 = jax.block_until_ready(fused_autoencoder(params, x))
    assert out_f32.shape == (batch, input_dim)
    assert jnp.allclose(out_f32, ref, atol=1e-4, rtol=1e-4), "f32 mismatch vs reference"

    # bf16 MXU-input path (v6e/v7x-friendly): bf16 weights/activations,
    # f32 accumulation — checked at bf16-appropriate tolerance.
    out_bf16 = jax.block_until_ready(
        fused_autoencoder(params, x, compute_dtype=jnp.bfloat16))
    assert out_bf16.shape == (batch, input_dim)
    assert jnp.allclose(out_bf16.astype(jnp.float32), ref, atol=1e-1, rtol=1e-1), \
        "bf16 mismatch vs reference"

    print("KERNEL_OK")
</pallas_src>

<mosaic_0001>
module attributes {stable_mosaic.version = 11 : i64} {
  func.func @_fused_mlp_kernel(%arg0: i32, %arg1: memref<16x32xf32, #tpu.memory_space<vmem>>, %arg2: memref<32x64xf32, #tpu.memory_space<vmem>>, %arg3: memref<1x64xf32, #tpu.memory_space<vmem>>, %arg4: memref<64x16xf32, #tpu.memory_space<vmem>>, %arg5: memref<1x16xf32, #tpu.memory_space<vmem>>, %arg6: memref<16x16xf32, #tpu.memory_space<vmem>>, %arg7: memref<1x16xf32, #tpu.memory_space<vmem>>, %arg8: memref<16x64xf32, #tpu.memory_space<vmem>>, %arg9: memref<1x64xf32, #tpu.memory_space<vmem>>, %arg10: memref<64x32xf32, #tpu.memory_space<vmem>>, %arg11: memref<1x32xf32, #tpu.memory_space<vmem>>, %arg12: memref<16x32xf32, #tpu.memory_space<vmem>>) attributes {dimension_semantics = [#tpu.dimension_semantics<parallel>], iteration_bounds = array<i64: 1>, scalar_prefetch = 0 : i64, scratch_operands = 0 : i64, tpu.core_type = #tpu.core_type<tc>, window_params = [{transform_indices = @transform_0, window_bounds = array<i64: 16, 32>}, {pipeline_mode = #tpu.pipeline_mode<synchronous>, transform_indices = @transform_1, window_bounds = array<i64: 32, 64>}, {pipeline_mode = #tpu.pipeline_mode<synchronous>, transform_indices = @transform_2, window_bounds = array<i64: 1, 64>}, {pipeline_mode = #tpu.pipeline_mode<synchronous>, transform_indices = @transform_3, window_bounds = array<i64: 64, 16>}, {pipeline_mode = #tpu.pipeline_mode<synchronous>, transform_indices = @transform_4, window_bounds = array<i64: 1, 16>}, {pipeline_mode = #tpu.pipeline_mode<synchronous>, transform_indices = @transform_5, window_bounds = array<i64: 16, 16>}, {pipeline_mode = #tpu.pipeline_mode<synchronous>, transform_indices = @transform_6, window_bounds = array<i64: 1, 16>}, {pipeline_mode = #tpu.pipeline_mode<synchronous>, transform_indices = @transform_7, window_bounds = array<i64: 16, 64>}, {pipeline_mode = #tpu.pipeline_mode<synchronous>, transform_indices = @transform_8, window_bounds = array<i64: 1, 64>}, {pipeline_mode = #tpu.pipeline_mode<synchronous>, transform_indices = @transform_9, window_bounds = array<i64: 64, 32>}, {pipeline_mode = #tpu.pipeline_mode<synchronous>, transform_indices = @transform_10, window_bounds = array<i64: 1, 32>}, {transform_indices = @transform_11, window_bounds = array<i64: 16, 32>}]} {
    %c0 = arith.constant 0 : index
    %c0_0 = arith.constant 0 : index
    %0 = vector.load %arg1[%c0, %c0_0] : memref<16x32xf32, #tpu.memory_space<vmem>>, vector<16x32xf32>
    %c0_1 = arith.constant 0 : index
    %c0_2 = arith.constant 0 : index
    %1 = vector.load %arg2[%c0_1, %c0_2] : memref<32x64xf32, #tpu.memory_space<vmem>>, vector<32x64xf32>
    %c0_3 = arith.constant 0 : index
    %c0_4 = arith.constant 0 : index
    %2 = vector.load %arg3[%c0_3, %c0_4] : memref<1x64xf32, #tpu.memory_space<vmem>>, vector<1x64xf32>
    %cst = arith.constant dense<0.000000e+00> : vector<16x64xf32>
    %3 = tpu.matmul %0, %1, %cst {dimension_numbers = #tpu.dot_dimension_numbers<[1], [0], [0], [1], [0, 0, 1, 1], [], []>} : vector<16x32xf32>, vector<32x64xf32>, vector<16x64xf32> -> vector<16x64xf32>
    %4 = vector.broadcast %2 : vector<1x64xf32> to vector<16x64xf32>
    %5 = arith.addf %3, %4 : vector<16x64xf32>
    %cst_5 = arith.constant 0.000000e+00 : f32
    %6 = vector.broadcast %cst_5 : f32 to vector<16x64xf32>
    %7 = arith.maximumf %5, %6 : vector<16x64xf32>
    %c0_6 = arith.constant 0 : index
    %c0_7 = arith.constant 0 : index
    %8 = vector.load %arg4[%c0_6, %c0_7] : memref<64x16xf32, #tpu.memory_space<vmem>>, vector<64x16xf32>
    %c0_8 = arith.constant 0 : index
    %c0_9 = arith.constant 0 : index
    %9 = vector.load %arg5[%c0_8, %c0_9] : memref<1x16xf32, #tpu.memory_space<vmem>>, vector<1x16xf32>
    %cst_10 = arith.constant dense<0.000000e+00> : vector<16x16xf32>
    %10 = tpu.matmul %7, %8, %cst_10 {dimension_numbers = #tpu.dot_dimension_numbers<[1], [0], [0], [1], [0, 0, 1, 1], [], []>} : vector<16x64xf32>, vector<64x16xf32>, vector<16x16xf32> -> vector<16x16xf32>
    %11 = vector.broadcast %9 : vector<1x16xf32> to vector<16x16xf32>
    %12 = arith.addf %10, %11 : vector<16x16xf32>
    %cst_11 = arith.constant 0.000000e+00 : f32
    %13 = vector.broadcast %cst_11 : f32 to vector<16x16xf32>
    %14 = arith.maximumf %12, %13 : vector<16x16xf32>
    %c0_12 = arith.constant 0 : index
    %c0_13 = arith.constant 0 : index
    %15 = vector.load %arg6[%c0_12, %c0_13] : memref<16x16xf32, #tpu.memory_space<vmem>>, vector<16x16xf32>
    %c0_14 = arith.constant 0 : index
    %c0_15 = arith.constant 0 : index
    %16 = vector.load %arg7[%c0_14, %c0_15] : memref<1x16xf32, #tpu.memory_space<vmem>>, vector<1x16xf32>
    %cst_16 = arith.constant dense<0.000000e+00> : vector<16x16xf32>
    %17 = tpu.matmul %14, %15, %cst_16 {dimension_numbers = #tpu.dot_dimension_numbers<[1], [0], [0], [1], [0, 0, 1, 1], [], []>} : vector<16x16xf32>, vector<16x16xf32>, vector<16x16xf32> -> vector<16x16xf32>
    %18 = vector.broadcast %16 : vector<1x16xf32> to vector<16x16xf32>
    %19 = arith.addf %17, %18 : vector<16x16xf32>
    %cst_17 = arith.constant 0.000000e+00 : f32
    %20 = vector.broadcast %cst_17 : f32 to vector<16x16xf32>
    %21 = arith.maximumf %19, %20 : vector<16x16xf32>
    %c0_18 = arith.constant 0 : index
    %c0_19 = arith.constant 0 : index
    %22 = vector.load %arg8[%c0_18, %c0_19] : memref<16x64xf32, #tpu.memory_space<vmem>>, vector<16x64xf32>
    %c0_20 = arith.constant 0 : index
    %c0_21 = arith.constant 0 : index
    %23 = vector.load %arg9[%c0_20, %c0_21] : memref<1x64xf32, #tpu.memory_space<vmem>>, vector<1x64xf32>
    %cst_22 = arith.constant dense<0.000000e+00> : vector<16x64xf32>
    %24 = tpu.matmul %21, %22, %cst_22 {dimension_numbers = #tpu.dot_dimension_numbers<[1], [0], [0], [1], [0, 0, 1, 1], [], []>} : vector<16x16xf32>, vector<16x64xf32>, vector<16x64xf32> -> vector<16x64xf32>
    %25 = vector.broadcast %23 : vector<1x64xf32> to vector<16x64xf32>
    %26 = arith.addf %24, %25 : vector<16x64xf32>
    %cst_23 = arith.constant 0.000000e+00 : f32
    %27 = vector.broadcast %cst_23 : f32 to vector<16x64xf32>
    %28 = arith.maximumf %26, %27 : vector<16x64xf32>
    %c0_24 = arith.constant 0 : index
    %c0_25 = arith.constant 0 : index
    %29 = vector.load %arg10[%c0_24, %c0_25] : memref<64x32xf32, #tpu.memory_space<vmem>>, vector<64x32xf32>
    %c0_26 = arith.constant 0 : index
    %c0_27 = arith.constant 0 : index
    %30 = vector.load %arg11[%c0_26, %c0_27] : memref<1x32xf32, #tpu.memory_space<vmem>>, vector<1x32xf32>
    %cst_28 = arith.constant dense<0.000000e+00> : vector<16x32xf32>
    %31 = tpu.matmul %28, %29, %cst_28 {dimension_numbers = #tpu.dot_dimension_numbers<[1], [0], [0], [1], [0, 0, 1, 1], [], []>} : vector<16x64xf32>, vector<64x32xf32>, vector<16x32xf32> -> vector<16x32xf32>
    %32 = vector.broadcast %30 : vector<1x32xf32> to vector<16x32xf32>
    %33 = arith.addf %31, %32 : vector<16x32xf32>
    %c0_29 = arith.constant 0 : index
    %c0_30 = arith.constant 0 : index
    %34 = vector.load %arg12[%c0_29, %c0_30] : memref<16x32xf32, #tpu.memory_space<vmem>>, vector<16x32xf32>
    tpu.vector_store %arg12[%c0_29, %c0_30], %33 {strides = array<i32>} : memref<16x32xf32, #tpu.memory_space<vmem>>, vector<16x32xf32>,
    return
  }
  func.func @transform_0(%arg0: i32) -> (i32, i32) {
    %c0_i32 = arith.constant 0 : i32
    %c0_i32_0 = arith.constant 0 : i32
    return %arg0, %c0_i32 : i32, i32
  }
  func.func @transform_1(%arg0: i32) -> (i32, i32) {
    %c0_i32 = arith.constant 0 : i32
    %c0_i32_0 = arith.constant 0 : i32
    %c0_i32_1 = arith.constant 0 : i32
    return %c0_i32, %c0_i32_0 : i32, i32
  }
  func.func @transform_2(%arg0: i32) -> (i32, i32) {
    %c0_i32 = arith.constant 0 : i32
    %c0_i32_0 = arith.constant 0 : i32
    %c0_i32_1 = arith.constant 0 : i32
    return %c0_i32, %c0_i32_0 : i32, i32
  }
  func.func @transform_3(%arg0: i32) -> (i32, i32) {
    %c0_i32 = arith.constant 0 : i32
    %c0_i32_0 = arith.constant 0 : i32
    %c0_i32_1 = arith.constant 0 : i32
    return %c0_i32, %c0_i32_0 : i32, i32
  }
  func.func @transform_4(%arg0: i32) -> (i32, i32) {
    %c0_i32 = arith.constant 0 : i32
    %c0_i32_0 = arith.constant 0 : i32
    %c0_i32_1 = arith.constant 0 : i32
    return %c0_i32, %c0_i32_0 : i32, i32
  }
  func.func @transform_5(%arg0: i32) -> (i32, i32) {
    %c0_i32 = arith.constant 0 : i32
    %c0_i32_0 = arith.constant 0 : i32
    %c0_i32_1 = arith.constant 0 : i32
    return %c0_i32, %c0_i32_0 : i32, i32
  }
  func.func @transform_6(%arg0: i32) -> (i32, i32) {
    %c0_i32 = arith.constant 0 : i32
    %c0_i32_0 = arith.constant 0 : i32
    %c0_i32_1 = arith.constant 0 : i32
    return %c0_i32, %c0_i32_0 : i32, i32
  }
  func.func @transform_7(%arg0: i32) -> (i32, i32) {
    %c0_i32 = arith.constant 0 : i32
    %c0_i32_0 = arith.constant 0 : i32
    %c0_i32_1 = arith.constant 0 : i32
    return %c0_i32, %c0_i32_0 : i32, i32
  }
  func.func @transform_8(%arg0: i32) -> (i32, i32) {
    %c0_i32 = arith.constant 0 : i32
    %c0_i32_0 = arith.constant 0 : i32
    %c0_i32_1 = arith.constant 0 : i32
    return %c0_i32, %c0_i32_0 : i32, i32
  }
  func.func @transform_9(%arg0: i32) -> (i32, i32) {
    %c0_i32 = arith.constant 0 : i32
    %c0_i32_0 = arith.constant 0 : i32
    %c0_i32_1 = arith.constant 0 : i32
    return %c0_i32, %c0_i32_0 : i32, i32
  }
  func.func @transform_10(%arg0: i32) -> (i32, i32) {
    %c0_i32 = arith.constant 0 : i32
    %c0_i32_0 = arith.constant 0 : i32
    %c0_i32_1 = arith.constant 0 : i32
    return %c0_i32, %c0_i32_0 : i32, i32
  }
  func.func @transform_11(%arg0: i32) -> (i32, i32) {
    %c0_i32 = arith.constant 0 : i32
    %c0_i32_0 = arith.constant 0 : i32
    return %arg0, %c0_i32 : i32, i32
  }
}

</mosaic_0001>

<bundles_post_ra>
// kernel: tpu_custom_call.1
= control target key start
LH: loop header
LB: loop body
LE: loop exit
PB: predicated region body
PF: predicated region fallthrough
CT: control target
= control target key end

     0   :  { %vm52_vm0 = vcmask 261120   ;;  %s842_s0 = inlined_call_operand.vmem [shape: f32[16,32], index: 0, kind: input, shape index: {}]   ;;  %s843_s1 = inlined_call_operand.vmem [shape: f32[32,64], index: 1, kind: input, shape index: {}]   ;;  %s844_s2 = inlined_call_operand.vmem [shape: f32[1,64], index: 2, kind: input, shape index: {}]   ;;  %s845_s3 = inlined_call_operand.vmem [shape: f32[64,16], index: 3, kind: input, shape index: {}]   ;;  %s846_s4 = inlined_call_operand.vmem [shape: f32[1,16], index: 4, kind: input, shape index: {}]   ;;  %s847_s5 = inlined_call_operand.vmem [shape: f32[16,16], index: 5, kind: input, shape index: {}]   ;;  %s848_s6 = inlined_call_operand.vmem [shape: f32[1,16], index: 6, kind: input, shape index: {}]   ;;  %s849_s7 = inlined_call_operand.vmem [shape: f32[16,64], index: 7, kind: input, shape index: {}]   ;;  %s850_s8 = inlined_call_operand.vmem [shape: f32[1,64], index: 8, kind: input, shape index: {}]   ;;  %s851_s9 = inlined_call_operand.vmem [shape: f32[64,32], index: 9, kind: input, shape index: {}]   ;;  %s852_s10 = inlined_call_operand.vmem [shape: f32[1,32], index: 10, kind: input, shape index: {}]   ;;  %s853_s11 = inlined_call_operand.hbm [shape: f32[16,32], index: 11, kind: output, shape index: {}]  }
   0x1   :  { %v44_v0 = vld [vmem:[%s843_s1 + $0x18] sm:$0xff]  ;;  %v43_v1 = vld [vmem:[%s843_s1 + $0x10] sm:$0xff]  ;;  %v39_v2 = vld [vmem:[%s842_s0] sm:$0xff] }
   0x2   :  { %583 = vmatprep.subr.mxu1 %v44_v0  ;;  %v42_v3 = vld [vmem:[%s843_s1 + $0x8] sm:$0xff]  ;;  %591 = vmatprep.mubr.msk.f32.mxu1 %vm52_vm0, %v39_v2 }
   0x3   :  { %584 = vmatpush3.msra.mxu1 %v44_v0 }
   0x4   :  { %585 = vmatprep.subr.mxu1 %v43_v1 }
   0x5   :  { %16 = vsyncpa [#allocation3], 0  ;;  %586 = vmatpush3.msra.mxu1 %v43_v1  ;;  %v41_v4 = vld [vmem:[%s843_s1] sm:$0xff]  ;;  %v40_v5 = vld [vmem:[%s842_s0 + $0x8] sm:$0xff]  ;;  %vm151_vm1 = vcmask 523264   ;;  %vm244_vm2 = vcmask 130048  }
   0x6   :  { %587 = vmatprep.subr.mxu1 %v42_v3  ;;  %v143_v6 = vld [vmem:[%s845_s3 + $0x38] sm:$0xff]  ;;  %v142_v7 = vld [vmem:[%s845_s3 + $0x30] sm:$0xff]  ;;  %v141_v8 = vld [vmem:[%s845_s3 + $0x28] sm:$0xff] }
   0x7   :  { %588 = vmatpush3.msra.mxu1 %v42_v3  ;;  %v140_v9 = vld [vmem:[%s845_s3 + $0x20] sm:$0xff]  ;;  %v139_v10 = vld [vmem:[%s845_s3 + $0x18] sm:$0xff]  ;;  %v138_v11 = vld [vmem:[%s845_s3 + $0x10] sm:$0xff] }
   0x8   :  { %589 = vmatprep.subr.mxu1 %v41_v4  ;;  %v137_v12 = vld [vmem:[%s845_s3 + $0x8] sm:$0xff]  ;;  %v136_v13 = vld [vmem:[%s845_s3] sm:$0xff]  ;;  %v427_v32 = vld [vmem:[%s851_s9 + $0x38] sm:$0xff] }
   0x9   :  { %590 = vmatpush3.msra.mxu1 %v41_v4  ;;  %v534_v14 = vld [vmem:[%s844_s2] ss:$0 sm:$0xff]  ;;  %v236_v21 = vld [vmem:[%s847_s5 + $0x8] sm:$0xff]  ;;  %v426_v40 = vld [vmem:[%s851_s9 + $0x30] sm:$0xff] }
   0xa   :  { %592 = vmatmul.mubr.msk.f32.vlgmr.msra.gmra.mxu1 %vm52_vm0, %v40_v5  ;;  %594 = vmatprep.subr.mxu1 %v143_v6  ;;  %v235_v22 = vld [vmem:[%s847_s5] sm:$0xff]  ;;  %v329_v30 = vld [vmem:[%s849_s7 + $0x8] sm:$0xff]  ;;  %v423_v43 = vld [vmem:[%s851_s9 + $0x18] sm:$0xff] }
   0xb   :  { %595 = vmatpush3.msra.mxu1 %v143_v6  ;;  %613 = vmatprep.subr.mxu0 %v236_v21  ;;  %v537_v23 = vld [vmem:[%s846_s4] ss:$0 sm:$0xff]  ;;  %v425_v41 = vld [vmem:[%s851_s9 + $0x28] sm:$0xff]  ;;  %v422_v44 = vld [vmem:[%s851_s9 + $0x10] sm:$0xff] }
   0xc   :  { %596 = vmatprep.subr.mxu1 %v142_v7  ;;  %614 = vmatpush3.msra.mxu0 %v236_v21  ;;  %v328_v31 = vld [vmem:[%s849_s7] sm:$0xff]  ;;  %v421_v45 = vld [vmem:[%s851_s9 + $0x8] sm:$0xff] }
   0xd   :  { %597 = vmatpush3.msra.mxu1 %v142_v7  ;;  %615 = vmatprep.subr.mxu0 %v235_v22  ;;  %v540_v33 = vld [vmem:[%s848_s6] ss:$0 sm:$0xff] }
   0xe   :  { %598 = vmatprep.subr.mxu1 %v141_v8  ;;  %616 = vmatpush3.msra.mxu0 %v235_v22  ;;  %v424_v42 = vld [vmem:[%s851_s9 + $0x20] sm:$0xff] }
   0xf   :  { %599 = vmatpush3.msra.mxu1 %v141_v8  ;;  %620 = vmatprep.subr.mxu0 %v329_v30  ;;  %v420_v46 = vld [vmem:[%s851_s9] sm:$0xff]  ;;  %s671_s9 = smov [#allocation2]  }
  0x10   :  { %600 = vmatprep.subr.mxu1 %v140_v9  ;;  %v543_v47 = vld [vmem:[%s850_s8] ss:$0 sm:$0xff]  ;;  %s523_s29 = sshll.u32 %s671_s9, 4  ;;  %s524_s29 = int_to_ptr.vmem [resolvable:$true] %s523_s29 }
  0x11   :  { %601 = vmatpush3.msra.mxu1 %v140_v9  ;;  %v546_v54 = vld [vmem:[%s852_s10] ss:$0 sm:$0xff]  ;;  %s649_s8 = scalar_lea.vmem %s524_s29, 256  ;;  %p654_p1 = scmp.lt.s32.totalorder %s524_s29, %s524_s29 }
  0x12   :  { %602 = vmatprep.subr.mxu1 %v139_v10  ;;  %p650_p0 = scmp.ne.s32.totalorder %s524_s29, %s649_s8  ;;  %p655_p2 = scmp.lt.s32.totalorder %s649_s8, %s649_s8 }
  0x13   :  { %603 = vmatpush3.msra.mxu1 %v139_v10 }
  0x14   :  { %604 = vmatprep.subr.mxu1 %v138_v11  ;;  %p656_p3 = por %p655_p2, %p654_p1 }
  0x15   :  { %605 = vmatpush3.msra.mxu1 %v138_v11 }
  0x16   :  { %606 = vmatprep.subr.mxu1 %v137_v12  ;;  %p657_p4 = pnand %p656_p3, %p650_p0 }
  0x17   :  { %607 = vmatpush3.msra.mxu1 %v137_v12 }
  0x18   :  { %608 = vmatprep.subr.mxu1 %v136_v13 }
  0x19   :  { %609 = vmatpush3.msra.mxu1 %v136_v13 }
  0xca   :  { %v593_v15 = vpop.f32.mrf.mxu1 }
  0xcb   :  { %v131_v16 = vadd.f32 %v593_v15, %v534_v14 }
  0xcc   :  { %v125_v17 = vpop.f32.mrf.mxu1 }
  0xcd   :  { %v126_v18 = vadd.f32 %v534_v14, %v125_v17  ;;  %v135_v20 = vmax.f32 %v131_v16, 0.0 }
  0xcf   :  { %v134_v19 = vmax.f32 %v126_v18, 0.0 }
  0xd1   :  { %610 = vmatprep.mubr.msk.f32.mxu1 %vm151_vm1, %v134_v19 }
  0xd2   :  { %611 = vmatmul.mubr.msk.f32.vlgmr.msra.gmra.mxu1 %vm151_vm1, %v135_v20 }
 0x192   :  { %v612_v24 = vpop.f32.mrf.mxu1 }
 0x193   :  { %v230_v25 = vadd.f32 %v612_v24, %v537_v23 }
 0x194   :  { %v224_v26 = vpop.f32.mrf.mxu1 }
 0x195   :  { %v225_v27 = vadd.f32 %v537_v23, %v224_v26  ;;  %v234_v29 = vmax.f32 %v230_v25, 0.0 }
 0x197   :  { %v233_v28 = vmax.f32 %v225_v27, 0.0 }
 0x199   :  { %617 = vmatprep.mubr.msk.f32.mxu0 %vm244_vm2, %v233_v28 }
 0x19a   :  { %618 = vmatmul.mubr.msk.f32.vlgmr.msra.gmra.mxu0 %vm244_vm2, %v234_v29 }
 0x19b   :  { %621 = vmatpush3.msra.mxu0 %v329_v30 }
 0x19c   :  { %622 = vmatprep.subr.mxu0 %v328_v31 }
 0x19d   :  { %623 = vmatpush3.msra.mxu0 %v328_v31 }
 0x19e   :  { %627 = vmatprep.subr.mxu0 %v427_v32 }
 0x25a   :  { %v619_v34 = vpop.f32.mrf.mxu0 }
 0x25b   :  { %v323_v35 = vadd.f32 %v619_v34, %v540_v33 }
 0x25c   :  { %v317_v36 = vpop.f32.mrf.mxu0 }
 0x25d   :  { %v318_v37 = vadd.f32 %v540_v33, %v317_v36  ;;  %v327_v39 = vmax.f32 %v323_v35, 0.0 }
 0x25f   :  { %v326_v38 = vmax.f32 %v318_v37, 0.0 }
 0x261   :  { %624 = vmatprep.mubr.msk.f32.mxu0 %vm244_vm2, %v326_v38 }
 0x262   :  { %625 = vmatmul.mubr.msk.f32.vlgmr.msra.gmra.mxu0 %vm244_vm2, %v327_v39 }
 0x263   :  { %628 = vmatpush3.msra.mxu0 %v427_v32 }
 0x264   :  { %629 = vmatprep.subr.mxu0 %v426_v40 }
 0x265   :  { %630 = vmatpush3.msra.mxu0 %v426_v40 }
 0x266   :  { %631 = vmatprep.subr.mxu0 %v425_v41 }
 0x267   :  { %632 = vmatpush3.msra.mxu0 %v425_v41 }
 0x268   :  { %633 = vmatprep.subr.mxu0 %v424_v42 }
 0x269   :  { %634 = vmatpush3.msra.mxu0 %v424_v42 }
 0x26a   :  { %635 = vmatprep.subr.mxu0 %v423_v43 }
 0x26b   :  { %636 = vmatpush3.msra.mxu0 %v423_v43 }
 0x26c   :  { %637 = vmatprep.subr.mxu0 %v422_v44 }
 0x26d   :  { %638 = vmatpush3.msra.mxu0 %v422_v44 }
 0x26e   :  { %639 = vmatprep.subr.mxu0 %v421_v45 }
 0x26f   :  { %640 = vmatpush3.msra.mxu0 %v421_v45 }
 0x270   :  { %641 = vmatprep.subr.mxu0 %v420_v46 }
 0x271   :  { %642 = vmatpush3.msra.mxu0 %v420_v46 }
 0x322   :  { %v626_v48 = vpop.f32.mrf.mxu0 }
 0x323   :  { %v415_v49 = vadd.f32 %v626_v48, %v543_v47 }
 0x324   :  { %v409_v50 = vpop.f32.mrf.mxu0 }
 0x325   :  { %v410_v51 = vadd.f32 %v543_v47, %v409_v50  ;;  %v419_v53 = vmax.f32 %v415_v49, 0.0 }
 0x327   :  { %v418_v52 = vmax.f32 %v410_v51, 0.0 }
 0x329   :  { %643 = vmatprep.mubr.msk.f32.mxu0 %vm151_vm1, %v418_v52 }
 0x32a   :  { %644 = vmatmul.mubr.msk.f32.vlgmr.msra.gmra.mxu0 %vm151_vm1, %v419_v53 }
 0x3ea   :  { %v645_v55 = vpop.f32.mrf.mxu0 }
 0x3eb   :  { %v513_v56 = vadd.f32 %v645_v55, %v546_v54 }
 0x3ec   :  { %v507_v57 = vpop.f32.mrf.mxu0 }
 0x3ed   :  { %517 = vst.msk [vmem:[#allocation2 + $0x8] sm:$0xff] %vm52_vm0, %v513_v56  ;;  %v508_v58 = vadd.f32 %v546_v54, %v507_v57 }
 0x3ef   :  { %516 = vst.msk [vmem:[#allocation2] sm:$0xff] %vm52_vm0, %v508_v58 }
 0x3f0   :  { %660 = shalt.err (!%p657_p4)
}
 0x3f1   :  { %s672_s30 = smov 128   ;;  %s673_s10 = smov 8  }
 0x3f2   :  { %529 = dma.vmem_to_hbm [thread:$0]  %s524_s29, 256, %s853_s11, [#allocation3], %s672_s30, %s672_s30, %s673_s10  }
 0x3f3   :  { %669 = dma.done.wait [#allocation3], 256  }
 0x3f4   :  { %670 = vsyncadd [#allocation3], 4294967040 }
 0x3f5   :  { %533 = vsyncpa [#allocation3], 1 }

</bundles_post_ra>
